<compile_context>
chip_gen: v6e
topology: v6e:2x2x1
jax: 0.10.0
libtpu: 0.0.40
codegen_flags: <defaults>
</compile_context>

<pallas_src>
import functools

import jax
import jax.numpy as jnp
from jax.experimental import pallas as pl
from jax.experimental.pallas import tpu as pltpu

_LANE = 128
_SUBLANE = 8


def _round_up(x, m):
    return ((x + m - 1) // m) * m


def _cdiv(a, b):
    return -(-a // b)


def _default_vmem_budget():
    """~3/4 of physical VMEM, capped at 96 MiB.
    v5e/v6e (128 MiB) -> 96 MiB; v7x (64 MiB) -> 48 MiB; fallback -> 48 MiB."""
    cap = 64 * 1024 * 1024
    try:
        cap = int(getattr(pltpu.get_tpu_info(), "vmem_capacity_bytes", cap))
    except Exception:
        pass
    return min((cap * 3) // 4, 96 * 1024 * 1024)


# ----------------------------------------------------------------------------- kernels


def _linear_kernel(x_ref, w_ref, b_ref, o_ref):
    """Single-K-block linear: resident W, streamed batch tiles.
    x tile is cast to the weight dtype in-kernel (cheap VPU, hidden under DMA)."""
    acc = jnp.dot(x_ref[...].astype(w_ref.dtype), w_ref[...],
                  preferred_element_type=jnp.float32)
    o_ref[...] = (acc + b_ref[...]).astype(o_ref.dtype)


def _linear_kernel_ktiled(x_ref, w_ref, b_ref, o_ref, acc_ref):
    """K-tiled linear: f32 VMEM accumulator, init at k==0, finalize at last k."""
    @pl.when(pl.program_id(1) == 0)
    def _init():
        acc_ref[...] = jnp.zeros_like(acc_ref)

    acc_ref[...] += jnp.dot(x_ref[...].astype(w_ref.dtype), w_ref[...],
                            preferred_element_type=jnp.float32)

    @pl.when(pl.program_id(1) == pl.num_programs(1) - 1)
    def _finalize():
        o_ref[...] = (acc_ref[...] + b_ref[...]).astype(o_ref.dtype)


# ----------------------------------------------------------------------------- tiling


def _choose_block_k(d_in, d_out_p, w_bytes, budget):
    """Pick the K (D_in) block. Pallas double-buffers every input, so the
    resident weight costs 2x; keep it to at most half the budget."""
    if 2 * d_in * d_out_p * w_bytes <= budget // 2:
        return d_in  # weight stays VMEM-resident, single K block
    # Stream W along K: largest multiple-of-128 divisor of d_in whose
    # double-buffered block takes at most half the budget.
    k = (d_in // _LANE) * _LANE
    while k >= _LANE:
        if d_in % k == 0 and 2 * k * d_out_p * w_bytes <= budget // 2:
            return k
        k -= _LANE
    # TODO(synk): no lane-multiple divisor of D_in fits; fall back to resident W
    # and rely on vmem_limit_bytes headroom (may fail to compile for huge D_in).
    return d_in


def _choose_tiles(batch, d_in, d_out_p, x_bytes, w_bytes, out_bytes,
                  budget, max_rows, block_k=None):
    tk = block_k if block_k is not None else _choose_block_k(
        d_in, d_out_p, w_bytes, budget)
    num_k = _cdiv(d_in, tk)

    # Fixed cost: double-buffered weight + bias blocks.
    fixed = 2 * tk * d_out_p * w_bytes + 2 * d_out_p * 4
    # Per batch row: double-buffered x and out tiles (+ f32 accumulator if K-tiled).
    per_row = 2 * tk * x_bytes + 2 * d_out_p * out_bytes
    if num_k > 1:
        per_row += d_out_p * 4

    avail = budget - fixed
    tb = avail // per_row if avail > per_row * _SUBLANE else _SUBLANE
    tb = max(_SUBLANE, (tb // _SUBLANE) * _SUBLANE)
    tb = min(tb, max_rows, _round_up(batch, _SUBLANE))
    if batch < _SUBLANE:
        tb = batch  # block dim equal to full array dim is always legal
    elif batch >= 2 * _SUBLANE and tb >= batch:
        # Keep >= 2 batch tiles so both v7x TensorCores get work (cheap elsewhere).
        tb = _round_up(_cdiv(batch, 2), _SUBLANE)
    return int(tb), int(tk), int(num_k)


# ----------------------------------------------------------------------------- forward


@functools.partial(jax.jit,
                   static_argnames=("out_features", "vmem_budget_bytes",
                                    "max_block_rows", "block_k"))
def text_classifier_forward(x, w_p, b_p, *, out_features=None,
                            vmem_budget_bytes=None, max_block_rows=2048,
                            block_k=None):
    """Linear forward.

    x:   [B, D_in]            (any float dtype; cast to w_p.dtype in-kernel)
    w_p: [D_in, D_out_p]      prepared weight (lane-padded, optionally bf16)
    b_p: [1, D_out_p] f32     prepared bias
    Returns [B, out_features] in x.dtype (out_features=None -> D_out_p).
    """
    B, D_in = x.shape
    assert w_p.shape[0] == D_in, "w_p must have shape [D_in, D_out_p]"
    if b_p.ndim == 1:  # guard: accept a (D_out_p,) bias
        b_p = b_p.reshape(1, -1)
    D_out_p = w_p.shape[1]
    out_dtype = x.dtype

    if vmem_budget_bytes is None:
        vmem_budget_bytes = _default_vmem_budget()
    if block_k is not None:
        assert block_k == D_in or (block_k % _LANE == 0 and D_in % block_k == 0), \
            "block_k must equal D_in or be a multiple of 128 that divides D_in"

    tb, tk, num_k = _choose_tiles(
        B, D_in, D_out_p,
        jnp.dtype(x.dtype).itemsize, jnp.dtype(w_p.dtype).itemsize,
        jnp.dtype(out_dtype).itemsize,
        vmem_budget_bytes, max_block_rows, block_k=block_k)

    cost = pl.CostEstimate(
        flops=2 * B * D_in * D_out_p,
        transcendentals=0,
        bytes_accessed=(x.size * x.dtype.itemsize
                        + w_p.size * w_p.dtype.itemsize
                        + b_p.size * b_p.dtype.itemsize
                        + B * D_out_p * jnp.dtype(out_dtype).itemsize),
    )

    if num_k == 1:
        grid = (_cdiv(B, tb),)
        in_specs = [
            pl.BlockSpec((tb, D_in), lambda i: (i, 0)),        # streamed batch tiles
            pl.BlockSpec((D_in, D_out_p), lambda i: (0, 0)),   # VMEM-resident weight
            pl.BlockSpec((1, D_out_p), lambda i: (0, 0)),      # VMEM-resident bias
        ]
        out_specs = pl.BlockSpec((tb, D_out_p), lambda i: (i, 0))
        kernel = _linear_kernel
        scratch = ()
        semantics = ("parallel",)
    else:
        grid = (_cdiv(B, tb), num_k)
        in_specs = [
            pl.BlockSpec((tb, tk), lambda i, k: (i, k)),
            pl.BlockSpec((tk, D_out_p), lambda i, k: (k, 0)),
            pl.BlockSpec((1, D_out_p), lambda i, k: (0, 0)),
        ]
        out_specs = pl.BlockSpec((tb, D_out_p), lambda i, k: (i, 0))
        kernel = _linear_kernel_ktiled
        scratch = (pltpu.VMEM((tb, D_out_p), jnp.float32),)
        semantics = ("parallel", "arbitrary")

    out = pl.pallas_call(
        kernel,
        out_shape=jax.ShapeDtypeStruct((B, D_out_p), out_dtype),
        grid=grid,
        in_specs=in_specs,
        out_specs=out_specs,
        scratch_shapes=scratch,
        compiler_params=pltpu.CompilerParams(
            dimension_semantics=semantics,
            vmem_limit_bytes=vmem_budget_bytes,
        ),
        cost_estimate=cost,
    )(x, w_p, b_p)

    if out_features is not None and out_features != D_out_p:
        out = out[:, :out_features]  # strip lane padding (output is tiny)
    return out


# ----------------------------------------------------------------------------- params


def init_params(key, input_dim, output_dim, dtype=jnp.float32):
    """Deterministic init mirroring nn.Linear's uniform(-1/sqrt(in), 1/sqrt(in))."""
    kw, kb = jax.random.split(key)
    bound = 1.0 / float(input_dim) ** 0.5
    # PyTorch stores weight as [out, in]; we keep the transposed [in, out] layout.
    w_t = jax.random.uniform(kw, (input_dim, output_dim), dtype, -bound, bound)
    b = jax.random.uniform(kb, (1, output_dim), dtype, -bound, bound)
    return w_t, b


def prepare_params(w_t, b, compute_dtype=None):
    """One-time prep (hoisted out of the per-call forward):
      * lane-pad out-features to a multiple of 128 (zero padding is exact)
      * optionally pre-cast the weight for narrower MXU operands (e.g. bf16)
      * bias kept in f32 (f32 accumulate + bias add inside the kernel)
    Returns (w_p, b_p, out_features)."""
    if b.ndim == 1:
        b = b.reshape(1, -1)
    out_features = w_t.shape[1]
    d_out_p = _round_up(out_features, _LANE)
    if d_out_p != out_features:
        w_t = jnp.pad(w_t, ((0, 0), (0, d_out_p - out_features)))
        b = jnp.pad(b, ((0, 0), (0, d_out_p - out_features)))
    if compute_dtype is not None:
        w_t = w_t.astype(compute_dtype)
    return w_t, b.astype(jnp.float32), out_features


# ----------------------------------------------------------------------------- tests


if __name__ == "__main__":
    key = jax.random.PRNGKey(0)
    k_x, k_p, k_x2, k_p2 = jax.random.split(key, 4)

    # --- small classifier head, f32 MXU path --------------------------------
    batch, input_dim, output_dim = 8, 32, 16
    x = jax.random.normal(k_x, (batch, input_dim), dtype=jnp.float32)
    w_t, b = init_params(k_p, input_dim, output_dim)
    ref = x @ w_t + b

    w_p, b_p, out_dim = prepare_params(w_t, b)
    out = text_classifier_forward(x, w_p, b_p, out_features=out_dim)
    jax.block_until_ready(out)
    assert out.shape == (batch, output_dim)
    assert jnp.allclose(out, ref, atol=1e-5, rtol=1e-5)

    # --- bf16 MXU operands (weight pre-cast once, x cast in-kernel) ---------
    w_bf, b_bf, out_dim = prepare_params(w_t, b, compute_dtype=jnp.bfloat16)
    out_bf = text_classifier_forward(x, w_bf, b_bf, out_features=out_dim)
    jax.block_until_ready(out_bf)
    assert out_bf.shape == (batch, output_dim)
    assert out_bf.dtype == x.dtype
    assert jnp.allclose(out_bf, ref, atol=5e-2, rtol=5e-2)

    # --- K-tiled path + ragged batch tile (accumulator & boundary masking) --
    batch2, input_dim2, output_dim2 = 50, 256, 16
    x2 = jax.random.normal(k_x2, (batch2, input_dim2), dtype=jnp.float32)
    w_t2, b2 = init_params(k_p2, input_dim2, output_dim2)
    ref2 = x2 @ w_t2 + b2
    w_p2, b_p2, out_dim2 = prepare_params(w_t2, b2)
    out2 = text_classifier_forward(x2, w_p2, b_p2, out_features=out_dim2,
                                   block_k=128)
    jax.block_until_ready(out2)
    assert out2.shape == (batch2, output_dim2)
    assert jnp.allclose(out2, ref2, atol=1e-3, rtol=1e-3)

    print("KERNEL_OK")
</pallas_src>

<mosaic_0001>
module attributes {stable_mosaic.version = 11 : i64} {
  func.func @_linear_kernel(%arg0: i32, %arg1: memref<8x32xf32, #tpu.memory_space<vmem>>, %arg2: memref<32x128xf32, #tpu.memory_space<vmem>>, %arg3: memref<1x128xf32, #tpu.memory_space<vmem>>, %arg4: memref<8x128xf32, #tpu.memory_space<vmem>>) attributes {dimension_semantics = [#tpu.dimension_semantics<parallel>], iteration_bounds = array<i64: 1>, scalar_prefetch = 0 : i64, scratch_operands = 0 : i64, tpu.core_type = #tpu.core_type<tc>, window_params = [{transform_indices = @transform_0, window_bounds = array<i64: 8, 32>}, {pipeline_mode = #tpu.pipeline_mode<synchronous>, transform_indices = @transform_1, window_bounds = array<i64: 32, 128>}, {pipeline_mode = #tpu.pipeline_mode<synchronous>, transform_indices = @transform_2, window_bounds = array<i64: 1, 128>}, {transform_indices = @transform_3, window_bounds = array<i64: 8, 128>}]} {
    %c0 = arith.constant 0 : index
    %c0_0 = arith.constant 0 : index
    %0 = vector.load %arg1[%c0, %c0_0] : memref<8x32xf32, #tpu.memory_space<vmem>>, vector<8x32xf32>
    %c0_1 = arith.constant 0 : index
    %c0_2 = arith.constant 0 : index
    %1 = vector.load %arg2[%c0_1, %c0_2] : memref<32x128xf32, #tpu.memory_space<vmem>>, vector<32x128xf32>
    %cst = arith.constant dense<0.000000e+00> : vector<8x128xf32>
    %2 = tpu.matmul %0, %1, %cst {dimension_numbers = #tpu.dot_dimension_numbers<[1], [0], [0], [1], [0, 0, 1, 1], [], []>} : vector<8x32xf32>, vector<32x128xf32>, vector<8x128xf32> -> vector<8x128xf32>
    %c0_3 = arith.constant 0 : index
    %c0_4 = arith.constant 0 : index
    %3 = vector.load %arg3[%c0_3, %c0_4] : memref<1x128xf32, #tpu.memory_space<vmem>>, vector<1x128xf32>
    %4 = vector.broadcast %3 : vector<1x128xf32> to vector<8x128xf32>
    %5 = arith.addf %2, %4 : vector<8x128xf32>
    %c0_5 = arith.constant 0 : index
    %c0_6 = arith.constant 0 : index
    %6 = vector.load %arg4[%c0_5, %c0_6] : memref<8x128xf32, #tpu.memory_space<vmem>>, vector<8x128xf32>
    tpu.vector_store %arg4[%c0_5, %c0_6], %5 {strides = array<i32>} : memref<8x128xf32, #tpu.memory_space<vmem>>, vector<8x128xf32>,
    return
  }
  func.func @transform_0(%arg0: i32) -> (i32, i32) {
    %c0_i32 = arith.constant 0 : i32
    %c0_i32_0 = arith.constant 0 : i32
    return %arg0, %c0_i32 : i32, i32
  }
  func.func @transform_1(%arg0: i32) -> (i32, i32) {
    %c0_i32 = arith.constant 0 : i32
    %c0_i32_0 = arith.constant 0 : i32
    %c0_i32_1 = arith.constant 0 : i32
    return %c0_i32, %c0_i32_0 : i32, i32
  }
  func.func @transform_2(%arg0: i32) -> (i32, i32) {
    %c0_i32 = arith.constant 0 : i32
    %c0_i32_0 = arith.constant 0 : i32
    %c0_i32_1 = arith.constant 0 : i32
    return %c0_i32, %c0_i32_0 : i32, i32
  }
  func.func @transform_3(%arg0: i32) -> (i32, i32) {
    %c0_i32 = arith.constant 0 : i32
    %c0_i32_0 = arith.constant 0 : i32
    return %arg0, %c0_i32 : i32, i32
  }
}

</mosaic_0001>

<bundles_post_ra>
// kernel: text_classifier_forward.1
= control target key start
LH: loop header
LB: loop body
LE: loop exit
PB: predicated region body
PF: predicated region fallthrough
CT: control target
= control target key end

     0   :  { %8 = vsyncpa [#allocation3], 0  ;;  %s274_s0 = inlined_call_operand.hbm [shape: f32[8,32], index: 0, kind: input, shape index: {}]   ;;  %s275_s1 = inlined_call_operand.hbm [shape: f32[32,128], index: 1, kind: input, shape index: {}]   ;;  %s276_s2 = inlined_call_operand.vmem [shape: f32[1,128], index: 2, kind: input, shape index: {}]   ;;  %s277_s3 = inlined_call_operand.hbm [shape: f32[8,128], index: 3, kind: output, shape index: {}]  }
   0x1   :  { %9 = vsyncpa [#allocation6], 0 }
   0x2   :  { %10 = vsyncpa [#allocation4], 0  ;;  %s235_s12 = smov [#allocation2]   ;;  %s236_s14 = smov [#allocation5]  }
   0x3   :  { %s17_s13 = sshll.u32 %s235_s12, 4  ;;  %s26_s15 = sshll.u32 %s236_s14, 4  ;;  %s18_s13 = int_to_ptr.vmem [resolvable:$true] %s17_s13  ;;  %s27_s15 = int_to_ptr.vmem [resolvable:$true] %s26_s15 }
   0x4   :  { %s177_s16 = scalar_lea.vmem %s18_s13, 128  ;;  %p182_p1 = scmp.lt.s32.totalorder %s18_s13, %s18_s13 }
   0x5   :  { %p178_p0 = scmp.ne.s32.totalorder %s18_s13, %s177_s16  ;;  %p183_p2 = scmp.lt.s32.totalorder %s177_s16, %s177_s16 }
   0x7   :  { %p184_p3 = por %p183_p2, %p182_p1 }
   0x9   :  { %p185_p4 = pnand %p184_p3, %p178_p0 }
   0xb   :  { %188 = shalt.err (!%p185_p4)
}
   0xc   :  { %20 = dma.hbm_to_vmem [thread:$0]  %s274_s0, 128, %s18_s13, [#allocation3]  }
   0xd   :  { %s197_s19 = scalar_lea.vmem %s27_s15, 512  ;;  %p202_p6 = scmp.lt.s32.totalorder %s27_s15, %s27_s15 }
   0xe   :  { %p198_p5 = scmp.ne.s32.totalorder %s27_s15, %s197_s19  ;;  %p203_p7 = scmp.lt.s32.totalorder %s197_s19, %s197_s19 }
  0x10   :  { %p204_p8 = por %p203_p7, %p202_p6 }
  0x12   :  { %p205_p9 = pnand %p204_p8, %p198_p5 }
  0x14   :  { %208 = shalt.err (!%p205_p9)
}
  0x15   :  { %s237_s20 = smov 128   ;;  %s238_s21 = smov 8  }
  0x16   :  { %32 = dma.hbm_to_vmem [thread:$0]  %s275_s1, 512, %s27_s15, [#allocation6], %s237_s20, %s237_s20, %s238_s21  }
  0x17   :  { %229 = dma.done.wait [#allocation3], 128  }
  0x18   :  { %230 = vsyncadd [#allocation3], 4294967168 }
  0x19   :  { %231 = dma.done.wait [#allocation6], 512  }
  0x1a   :  { %232 = vsyncadd [#allocation6], 4294966784  ;;  %v239_v0 = vmov 0.0   ;;  %vm240_vm0 = vmmov 0   ;;  %v45_v1 = vld [vmem:[#allocation5 + $0x18] sm:$0xff]  ;;  %v44_v2 = vld [vmem:[#allocation5 + $0x10] sm:$0xff] }
  0x1b   :  { %151 = vmatprep.subr.mxu0 %v239_v0  ;;  %159 = vmatprep.mubr.msk.f32.mxu0 %vm240_vm0, %v239_v0  ;;  %v43_v3 = vld [vmem:[#allocation5 + $0x8] sm:$0xff]  ;;  %v42_v4 = vld [vmem:[#allocation5] sm:$0xff]  ;;  %v41_v5 = vld [vmem:[#allocation2] sm:$0xff]  ;;  %vm53_vm1 = vcmask 261120   ;;  %s241_s24 = smov [#allocation7]  }
  0x1c   :  { %152 = vmatpush3.msra.mxu0 %v45_v1  ;;  %v144_v6 = vld [vmem:[%s276_s2] ss:$0 sm:$0xff]  ;;  %s134_s25 = sshll.u32 %s241_s24, 4  ;;  %s135_s25 = int_to_ptr.vmem [resolvable:$true] %s134_s25 }
  0x1d   :  { %153 = vmatprep.subr.mxu0 %v239_v0  ;;  %s209_s26 = scalar_lea.vmem %s135_s25, 128  ;;  %p214_p11 = scmp.lt.s32.totalorder %s135_s25, %s135_s25 }
  0x1e   :  { %154 = vmatpush3.msra.mxu0 %v44_v2  ;;  %p210_p10 = scmp.ne.s32.totalorder %s135_s25, %s209_s26  ;;  %p215_p12 = scmp.lt.s32.totalorder %s209_s26, %s209_s26 }
  0x1f   :  { %155 = vmatprep.subr.mxu0 %v239_v0 }
  0x20   :  { %156 = vmatpush3.msra.mxu0 %v43_v3  ;;  %p216_p13 = por %p215_p12, %p214_p11 }
  0x21   :  { %157 = vmatprep.subr.mxu0 %v239_v0 }
  0x22   :  { %158 = vmatpush3.msra.mxu0 %v42_v4  ;;  %p217_p0 = pnand %p216_p13, %p210_p10 }
  0x23   :  { %160 = vmatmul.mubr.msk.f32.vlgmr.msra.gmra.mxu0 %vm53_vm1, %v41_v5 }
  0xe3   :  { %v123_v7 = vpop.f32.mrf.mxu0 }
  0xe4   :  { %v124_v8 = vadd.f32 %v144_v6, %v123_v7 }
  0xe5   :  { %v161_v9 = vpop.f32.mrf.mxu0 }
  0xe6   :  { %127 = vst [vmem:[#allocation7] sm:$0xff] %v124_v8 }
  0xe7   :  { %220 = shalt.err (!%p217_p0)
}
  0xe8   :  { %137 = dma.vmem_to_hbm [thread:$0]  %s135_s25, 128, %s277_s3, [#allocation4]  }
  0xe9   :  { %233 = dma.done.wait [#allocation4], 128  }
  0xea   :  { %234 = vsyncadd [#allocation4], 4294967168 }
  0xeb   :  { %141 = vsyncpa [#allocation3], 1 }
  0xec   :  { %142 = vsyncpa [#allocation6], 1 }
  0xed   :  { %143 = vsyncpa [#allocation4], 1 }

</bundles_post_ra>
